<compile_context>
chip_gen: v5e
topology: v5e:2x2
jax: 0.10.0
libtpu: 0.0.40
codegen_flags: <defaults>
</compile_context>

<pallas_src>
import functools

import jax
import jax.numpy as jnp
from jax import lax
from jax.experimental import pallas as pl
from jax.experimental.pallas import tpu as pltpu


# ---------------------------------------------------------------------------
# Pass 1: standardize each branch once (f32 math), emit zero-padded bf16.
# ---------------------------------------------------------------------------
def _standardize_kernel(x_ref, y_ref, xn_ref, yn_ref, *, n_true):
  """Standardizes one (rows, TD) feature tile of each branch."""

  def stand_and_store(v_ref, o_ref):
    v = v_ref[...].astype(jnp.float32)                 # (r_in, TD)
    r_in, td = v.shape
    if r_in > n_true:                                  # zero-padded rows present
      row_ids = lax.broadcasted_iota(jnp.int32, (r_in, td), 0)
      mask = row_ids < n_true
      v = jnp.where(mask, v, 0.0)
    mean = jnp.sum(v, axis=0, keepdims=True) * (1.0 / n_true)
    c = v - mean
    if r_in > n_true:
      c = jnp.where(mask, c, 0.0)
    # torch.std default: unbiased (ddof = 1).
    var = jnp.sum(c * c, axis=0, keepdims=True) * (1.0 / (n_true - 1))
    s = c * lax.rsqrt(var)                             # (v - mean) / std
    r_out = o_ref.shape[0]
    if r_out > r_in:                                   # pad rows -> exact matmul
      s = jnp.concatenate(
          [s, jnp.zeros((r_out - r_in, td), s.dtype)], axis=0)
    o_ref[...] = s.astype(o_ref.dtype)

  stand_and_store(x_ref, xn_ref)
  stand_and_store(y_ref, yn_ref)


# ---------------------------------------------------------------------------
# Pass 2: tiled cross-correlation + Barlow loss epilogue.
# ---------------------------------------------------------------------------
def _cross_corr_loss_kernel(xn_ref, yn_ref, out_ref, *, inv_nb1, temp, tile_d):
  i = pl.program_id(0)
  j = pl.program_id(1)

  # Fresh accumulator block for each row-tile i (j is the inner sweep).
  @pl.when(j == 0)
  def _():
    out_ref[...] = jnp.zeros_like(out_ref)

  xt = xn_ref[...]                                     # (Np, TD) bf16, i-resident
  if yn_ref.shape[1] == tile_d:
    yt = yn_ref[...]                                   # streamed per-j tile
  else:
    col0 = j * tile_d                                  # full y resident in VMEM
    if tile_d % 128 == 0:
      col0 = pl.multiple_of(col0, 128)
    yt = yn_ref[:, pl.ds(col0, tile_d)]

  # Raw cross-correlation tile: contract over the (zero-padded) row axis.
  # bf16 x bf16 on the MXU, f32 accumulate.
  c = lax.dot_general(xt, yt, (((0,), (0,)), ((), ())),
                      preferred_element_type=jnp.float32)   # (TD, TD) f32

  inv2 = inv_nb1 * inv_nb1

  @pl.when(i != j)
  def _():
    # Off-diagonal-only tile: one square + one full reduction, scalars folded
    # into the final scalar (no (TD, TD) scaling pass, no iotas).
    out_ref[...] = out_ref[...] + (temp * inv2) * jnp.sum(c * c)

  @pl.when(i == j)
  def _():
    sq = c * c
    total_sq = jnp.sum(sq)
    r_ids = lax.broadcasted_iota(jnp.int32, c.shape, 0)
    c_ids = lax.broadcasted_iota(jnp.int32, c.shape, 1)
    dmask = r_ids == c_ids
    diag_sq = jnp.sum(jnp.where(dmask, sq, 0.0))
    diag_sum = jnp.sum(jnp.where(dmask, c, 0.0))
    # sum_d (inv*c_dd - 1)^2 = inv^2*diag_sq - 2*inv*diag_sum + TD
    on_diag = inv2 * diag_sq - 2.0 * inv_nb1 * diag_sum + float(tile_d)
    off_diag = inv2 * (total_sq - diag_sq)
    out_ref[...] = out_ref[...] + (on_diag + temp * off_diag)


# ---------------------------------------------------------------------------
# Wrapper.
# ---------------------------------------------------------------------------
def barlow_sample_loss(outputs, *, temp=0.01, n_batch=2, tile_d=None,
                       y_resident_max_bytes=8 * 1024 * 1024):
  """Pallas equivalent of BarlowSampleLoss.forward.

  outputs: (2*N, D) projection-head outputs; rows [:N] are the CFP branch,
           rows [N:] the OCT branch (== torch.chunk(2, dim=0)).
  """
  assert outputs.ndim == 2 and outputs.shape[0] % 2 == 0, outputs.shape
  two_n, d = outputs.shape
  n = two_n // 2
  assert n >= 2, "need at least 2 samples per branch for std(ddof=1)"

  # Lane-aligned feature tile, capped at 512 so VMEM stays within budget on
  # v7x (64 MiB / TC) as well as v5e/v6e.  Falls back to one full-width tile
  # when D is not a multiple of 128.
  if tile_d is None:
    tile_d = d
    for cand in (512, 256, 128):
      if d % cand == 0:
        tile_d = cand
        break
  assert d % tile_d == 0, (d, tile_d)
  n_tiles = d // tile_d

  # Rows padded to the bf16-native sublane multiple (16).
  n_pad = -(-n // 16) * 16

  if n % 8 == 0:
    # Sublane-aligned: read x / y straight out of `outputs` (no HBM copies).
    x_in, y_in = outputs, outputs
    in_rows = n
    x_spec = pl.BlockSpec((in_rows, tile_d), lambda t: (0, t))
    y_spec = pl.BlockSpec((in_rows, tile_d), lambda t: (1, t))
  else:
    pad = jnp.zeros((n_pad - n, d), outputs.dtype)
    x_in = jnp.concatenate([outputs[:n], pad], axis=0)
    y_in = jnp.concatenate([outputs[n:], pad], axis=0)
    in_rows = n_pad
    x_spec = pl.BlockSpec((in_rows, tile_d), lambda t: (0, t))
    y_spec = pl.BlockSpec((in_rows, tile_d), lambda t: (0, t))

  # ---- pass 1: standardize each branch once, emit zero-padded bf16 ----
  std_kernel = functools.partial(_standardize_kernel, n_true=int(n))
  xn, yn = pl.pallas_call(
      std_kernel,
      out_shape=(jax.ShapeDtypeStruct((n_pad, d), jnp.bfloat16),
                 jax.ShapeDtypeStruct((n_pad, d), jnp.bfloat16)),
      grid_spec=pl.GridSpec(
          grid=(n_tiles,),
          in_specs=[x_spec, y_spec],
          out_specs=(pl.BlockSpec((n_pad, tile_d), lambda t: (0, t)),
                     pl.BlockSpec((n_pad, tile_d), lambda t: (0, t))),
      ),
      compiler_params=pltpu.CompilerParams(
          dimension_semantics=("parallel",)),
  )(x_in, y_in)

  # ---- pass 2: tiled cross-correlation + loss ----
  itemsize = 2  # bf16
  y_resident = n_pad * d * itemsize <= y_resident_max_bytes
  if y_resident:
    # Whole standardized y stays VMEM-resident (constant block index) instead
    # of being re-streamed from HBM for every row-tile i.
    y_spec2 = pl.BlockSpec((n_pad, d), lambda i, j: (0, 0))
    y_bytes = n_pad * d * itemsize
  else:
    y_spec2 = pl.BlockSpec((n_pad, tile_d), lambda i, j: (0, j))
    y_bytes = n_tiles * n_pad * d * itemsize

  cc_kernel = functools.partial(
      _cross_corr_loss_kernel,
      inv_nb1=1.0 / float(n_batch - 1),
      temp=float(temp),
      tile_d=int(tile_d))

  cost = pl.CostEstimate(
      flops=int(2 * n_pad * d * d),
      transcendentals=0,
      bytes_accessed=int(n_pad * d * itemsize + y_bytes
                         + n_tiles * 8 * 128 * 4))

  partials = pl.pallas_call(
      cc_kernel,
      out_shape=jax.ShapeDtypeStruct((n_tiles * 8, 128), jnp.float32),
      grid_spec=pl.GridSpec(
          grid=(n_tiles, n_tiles),
          in_specs=[
              # x tile depends only on i -> VMEM-resident across the j sweep.
              pl.BlockSpec((n_pad, tile_d), lambda i, j: (0, i)),
              y_spec2,
          ],
          out_specs=pl.BlockSpec((8, 128), lambda i, j: (i, 0)),
      ),
      compiler_params=pltpu.CompilerParams(
          dimension_semantics=("parallel", "arbitrary"),
          vmem_limit_bytes=48 * 1024 * 1024),
      cost_estimate=cost,
  )(xn, yn)

  # Each (8, 128) row-block holds one per-i partial broadcast across the block;
  # pick one element per block and reduce (tiny, outside the kernel).
  return jnp.sum(partials[::8, 0])


def barlow_sample_loss_ref(outputs, *, temp=0.01, n_batch=2):
  """Pure-JAX reference mirroring the PyTorch module."""
  n = outputs.shape[0] // 2
  x, y = outputs[:n].astype(jnp.float32), outputs[n:].astype(jnp.float32)

  def stand(t):
    return (t - jnp.mean(t, axis=0)) / jnp.std(t, axis=0, ddof=1)

  xn, yn = stand(x), stand(y)
  cc = xn.T @ yn / (n_batch - 1)
  diag = jnp.diagonal(cc)
  on_diag = jnp.sum((diag - 1.0) ** 2)
  off_diag = jnp.sum(cc * cc) - jnp.sum(diag * diag)
  return on_diag + temp * off_diag


if __name__ == "__main__":
  key = jax.random.PRNGKey(0)

  # Small deterministic example: batch=2 samples, 5 augmentations per sample,
  # projection dim 256 -> outputs (2*N, D) = (20, 256).
  batch = 2
  n_aug = 5
  out_dim = 256
  temp = 0.01
  n_rows = batch * n_aug                    # rows per modality branch

  outputs = jax.random.normal(key, (2 * n_rows, out_dim), jnp.float32)

  loss_fn = jax.jit(lambda o: barlow_sample_loss(o, temp=temp, n_batch=batch))
  loss = jax.block_until_ready(loss_fn(outputs))

  ref = barlow_sample_loss_ref(outputs, temp=temp, n_batch=batch)

  assert loss.shape == (), loss.shape
  assert bool(jnp.isfinite(loss)), loss
  # bf16 MXU matmul (f32 accumulate): allow ~1e-3 relative slack vs f32 ref.
  assert bool(jnp.allclose(loss, ref, rtol=1e-3, atol=1e-3)), (loss, ref)
  print("KERNEL_OK")
</pallas_src>

<mosaic_0001>
module attributes {stable_mosaic.version = 11 : i64} {
  func.func @_standardize_kernel(%arg0: i32, %arg1: memref<16x256xf32, #tpu.memory_space<vmem>>, %arg2: memref<16x256xf32, #tpu.memory_space<vmem>>, %arg3: memref<16x256xbf16, #tpu.memory_space<vmem>>, %arg4: memref<16x256xbf16, #tpu.memory_space<vmem>>) attributes {dimension_semantics = [#tpu.dimension_semantics<parallel>], iteration_bounds = array<i64: 1>, scalar_prefetch = 0 : i64, scratch_operands = 0 : i64, tpu.core_type = #tpu.core_type<tc>, window_params = [{transform_indices = @transform_0, window_bounds = array<i64: 16, 256>}, {transform_indices = @transform_1, window_bounds = array<i64: 16, 256>}, {transform_indices = @transform_2, window_bounds = array<i64: 16, 256>}, {transform_indices = @transform_3, window_bounds = array<i64: 16, 256>}]} {
    %c0 = arith.constant 0 : index
    %c0_0 = arith.constant 0 : index
    %0 = vector.load %arg1[%c0, %c0_0] : memref<16x256xf32, #tpu.memory_space<vmem>>, vector<16x256xf32>
    %1 = tpu.iota {dimensions = array<i32: 0>} : vector<16x256xi32>
    %c10_i32 = arith.constant 10 : i32
    %2 = vector.broadcast %c10_i32 : i32 to vector<16x256xi32>
    %3 = arith.cmpi slt, %1, %2 : vector<16x256xi32>
    %cst = arith.constant 0.000000e+00 : f32
    %4 = vector.broadcast %cst : f32 to vector<16x256xf32>
    %5 = arith.select %3, %0, %4 : vector<16x256xi1>, vector<16x256xf32>
    %cst_1 = arith.constant dense<0.000000e+00> : vector<256xf32>
    %6 = vector.multi_reduction <add>, %5, %cst_1 [0] : vector<16x256xf32> to vector<256xf32>
    %7 = vector.shape_cast %6 : vector<256xf32> to vector<1x256xf32>
    %cst_2 = arith.constant 1.000000e-01 : f32
    %8 = vector.broadcast %cst_2 : f32 to vector<1x256xf32>
    %9 = arith.mulf %7, %8 : vector<1x256xf32>
    %10 = vector.broadcast %9 : vector<1x256xf32> to vector<16x256xf32>
    %11 = arith.subf %5, %10 : vector<16x256xf32>
    %cst_3 = arith.constant 0.000000e+00 : f32
    %12 = vector.broadcast %cst_3 : f32 to vector<16x256xf32>
    %13 = arith.select %3, %11, %12 : vector<16x256xi1>, vector<16x256xf32>
    %14 = arith.mulf %13, %13 : vector<16x256xf32>
    %cst_4 = arith.constant dense<0.000000e+00> : vector<256xf32>
    %15 = vector.multi_reduction <add>, %14, %cst_4 [0] : vector<16x256xf32> to vector<256xf32>
    %16 = vector.shape_cast %15 : vector<256xf32> to vector<1x256xf32>
    %cst_5 = arith.constant 0.111111112 : f32
    %17 = vector.broadcast %cst_5 : f32 to vector<1x256xf32>
    %18 = arith.mulf %16, %17 : vector<1x256xf32>
    %19 = math.rsqrt %18 : vector<1x256xf32>
    %20 = vector.broadcast %19 : vector<1x256xf32> to vector<16x256xf32>
    %21 = arith.mulf %13, %20 : vector<16x256xf32>
    %22 = arith.truncf %21 : vector<16x256xf32> to vector<16x256xbf16>
    %c0_6 = arith.constant 0 : index
    %c0_7 = arith.constant 0 : index
    %23 = vector.load %arg3[%c0_6, %c0_7] : memref<16x256xbf16, #tpu.memory_space<vmem>>, vector<16x256xbf16>
    tpu.vector_store %arg3[%c0_6, %c0_7], %22 {strides = array<i32>} : memref<16x256xbf16, #tpu.memory_space<vmem>>, vector<16x256xbf16>,
    %c0_8 = arith.constant 0 : index
    %c0_9 = arith.constant 0 : index
    %24 = vector.load %arg2[%c0_8, %c0_9] : memref<16x256xf32, #tpu.memory_space<vmem>>, vector<16x256xf32>
    %25 = tpu.iota {dimensions = array<i32: 0>} : vector<16x256xi32>
    %c10_i32_10 = arith.constant 10 : i32
    %26 = vector.broadcast %c10_i32_10 : i32 to vector<16x256xi32>
    %27 = arith.cmpi slt, %25, %26 : vector<16x256xi32>
    %cst_11 = arith.constant 0.000000e+00 : f32
    %28 = vector.broadcast %cst_11 : f32 to vector<16x256xf32>
    %29 = arith.select %27, %24, %28 : vector<16x256xi1>, vector<16x256xf32>
    %cst_12 = arith.constant dense<0.000000e+00> : vector<256xf32>
    %30 = vector.multi_reduction <add>, %29, %cst_12 [0] : vector<16x256xf32> to vector<256xf32>
    %31 = vector.shape_cast %30 : vector<256xf32> to vector<1x256xf32>
    %cst_13 = arith.constant 1.000000e-01 : f32
    %32 = vector.broadcast %cst_13 : f32 to vector<1x256xf32>
    %33 = arith.mulf %31, %32 : vector<1x256xf32>
    %34 = vector.broadcast %33 : vector<1x256xf32> to vector<16x256xf32>
    %35 = arith.subf %29, %34 : vector<16x256xf32>
    %cst_14 = arith.constant 0.000000e+00 : f32
    %36 = vector.broadcast %cst_14 : f32 to vector<16x256xf32>
    %37 = arith.select %27, %35, %36 : vector<16x256xi1>, vector<16x256xf32>
    %38 = arith.mulf %37, %37 : vector<16x256xf32>
    %cst_15 = arith.constant dense<0.000000e+00> : vector<256xf32>
    %39 = vector.multi_reduction <add>, %38, %cst_15 [0] : vector<16x256xf32> to vector<256xf32>
    %40 = vector.shape_cast %39 : vector<256xf32> to vector<1x256xf32>
    %cst_16 = arith.constant 0.111111112 : f32
    %41 = vector.broadcast %cst_16 : f32 to vector<1x256xf32>
    %42 = arith.mulf %40, %41 : vector<1x256xf32>
    %43 = math.rsqrt %42 : vector<1x256xf32>
    %44 = vector.broadcast %43 : vector<1x256xf32> to vector<16x256xf32>
    %45 = arith.mulf %37, %44 : vector<16x256xf32>
    %46 = arith.truncf %45 : vector<16x256xf32> to vector<16x256xbf16>
    %c0_17 = arith.constant 0 : index
    %c0_18 = arith.constant 0 : index
    %47 = vector.load %arg4[%c0_17, %c0_18] : memref<16x256xbf16, #tpu.memory_space<vmem>>, vector<16x256xbf16>
    tpu.vector_store %arg4[%c0_17, %c0_18], %46 {strides = array<i32>} : memref<16x256xbf16, #tpu.memory_space<vmem>>, vector<16x256xbf16>,
    return
  }
  func.func @transform_0(%arg0: i32) -> (i32, i32) {
    %c0_i32 = arith.constant 0 : i32
    %c0_i32_0 = arith.constant 0 : i32
    return %c0_i32, %arg0 : i32, i32
  }
  func.func @transform_1(%arg0: i32) -> (i32, i32) {
    %c0_i32 = arith.constant 0 : i32
    %c0_i32_0 = arith.constant 0 : i32
    return %c0_i32, %arg0 : i32, i32
  }
  func.func @transform_2(%arg0: i32) -> (i32, i32) {
    %c0_i32 = arith.constant 0 : i32
    %c0_i32_0 = arith.constant 0 : i32
    return %c0_i32, %arg0 : i32, i32
  }
  func.func @transform_3(%arg0: i32) -> (i32, i32) {
    %c0_i32 = arith.constant 0 : i32
    %c0_i32_0 = arith.constant 0 : i32
    return %c0_i32, %arg0 : i32, i32
  }
}

module attributes {stable_mosaic.version = 11 : i64} {
  func.func @_cross_corr_loss_kernel(%arg0: i32, %arg1: i32, %arg2: memref<16x256xbf16, #tpu.memory_space<vmem>>, %arg3: memref<16x256xbf16, #tpu.memory_space<vmem>>, %arg4: memref<8x128xf32, #tpu.memory_space<vmem>>) attributes {dimension_semantics = [#tpu.dimension_semantics<parallel>, #tpu.dimension_semantics<arbitrary>], iteration_bounds = array<i64: 1, 1>, scalar_prefetch = 0 : i64, scratch_operands = 0 : i64, tpu.core_type = #tpu.core_type<tc>, window_params = [{transform_indices = @transform_0, window_bounds = array<i64: 16, 256>}, {pipeline_mode = #tpu.pipeline_mode<synchronous>, transform_indices = @transform_1, window_bounds = array<i64: 16, 256>}, {transform_indices = @transform_2, window_bounds = array<i64: 8, 128>}]} {
    %c0_i32 = arith.constant 0 : i32
    %0 = arith.cmpi eq, %arg1, %c0_i32 : i32
    %1 = arith.extui %0 : i1 to i32
    %c0_i32_0 = arith.constant 0 : i32
    %2 = arith.cmpi ne, %1, %c0_i32_0 : i32
    scf.if %2 {
      %cst_6 = arith.constant 0.000000e+00 : f32
      %12 = vector.broadcast %cst_6 : f32 to vector<8x128xf32>
      %c0_7 = arith.constant 0 : index
      %c0_8 = arith.constant 0 : index
      %13 = vector.load %arg4[%c0_7, %c0_8] : memref<8x128xf32, #tpu.memory_space<vmem>>, vector<8x128xf32>
      tpu.vector_store %arg4[%c0_7, %c0_8], %12 {strides = array<i32>} : memref<8x128xf32, #tpu.memory_space<vmem>>, vector<8x128xf32>,
    } else {
    }
    %c0 = arith.constant 0 : index
    %c0_1 = arith.constant 0 : index
    %3 = vector.load %arg2[%c0, %c0_1] : memref<16x256xbf16, #tpu.memory_space<vmem>>, vector<16x256xbf16>
    %c0_2 = arith.constant 0 : index
    %c0_3 = arith.constant 0 : index
    %4 = vector.load %arg3[%c0_2, %c0_3] : memref<16x256xbf16, #tpu.memory_space<vmem>>, vector<16x256xbf16>
    %cst = arith.constant dense<0.000000e+00> : vector<256x256xf32>
    %5 = tpu.matmul %3, %4, %cst {dimension_numbers = #tpu.dot_dimension_numbers<[0], [0], [1], [1], [0, 1, 1, 1], [], []>} : vector<16x256xbf16>, vector<16x256xbf16>, vector<256x256xf32> -> vector<256x256xf32>
    %6 = arith.cmpi ne, %arg0, %arg1 : i32
    %7 = arith.extui %6 : i1 to i32
    %c0_i32_4 = arith.constant 0 : i32
    %8 = arith.cmpi ne, %7, %c0_i32_4 : i32
    scf.if %8 {
      %c0_6 = arith.constant 0 : index
      %c0_7 = arith.constant 0 : index
      %12 = vector.load %arg4[%c0_6, %c0_7] : memref<8x128xf32, #tpu.memory_space<vmem>>, vector<8x128xf32>
      %13 = arith.mulf %5, %5 : vector<256x256xf32>
      %14 = vector.shape_cast %13 : vector<256x256xf32> to vector<1x256x256xf32>
      %cst_8 = arith.constant dense<0.000000e+00> : vector<1xf32>
      %15 = vector.multi_reduction <add>, %14, %cst_8 [1, 2] : vector<1x256x256xf32> to vector<1xf32>
      %16 = vector.shape_cast %15 : vector<1xf32> to vector<1x1x1xf32>
      %17 = vector.extract %16[0, 0, 0] : f32 from vector<1x1x1xf32>
      %cst_9 = arith.constant 0.00999999977 : f32
      %18 = arith.mulf %cst_9, %17 : f32
      %19 = vector.broadcast %18 : f32 to vector<8x128xf32>
      %20 = arith.addf %12, %19 : vector<8x128xf32>
      %c0_10 = arith.constant 0 : index
      %c0_11 = arith.constant 0 : index
      %21 = vector.load %arg4[%c0_10, %c0_11] : memref<8x128xf32, #tpu.memory_space<vmem>>, vector<8x128xf32>
      tpu.vector_store %arg4[%c0_10, %c0_11], %20 {strides = array<i32>} : memref<8x128xf32, #tpu.memory_space<vmem>>, vector<8x128xf32>,
    } else {
    }
    %9 = arith.cmpi eq, %arg0, %arg1 : i32
    %10 = arith.extui %9 : i1 to i32
    %c0_i32_5 = arith.constant 0 : i32
    %11 = arith.cmpi ne, %10, %c0_i32_5 : i32
    scf.if %11 {
      %12 = arith.mulf %5, %5 : vector<256x256xf32>
      %13 = vector.shape_cast %12 : vector<256x256xf32> to vector<1x256x256xf32>
      %cst_6 = arith.constant dense<0.000000e+00> : vector<1xf32>
      %14 = vector.multi_reduction <add>, %13, %cst_6 [1, 2] : vector<1x256x256xf32> to vector<1xf32>
      %15 = vector.shape_cast %14 : vector<1xf32> to vector<1x1x1xf32>
      %16 = vector.extract %15[0, 0, 0] : f32 from vector<1x1x1xf32>
      %17 = tpu.iota {dimensions = array<i32: 0>} : vector<256x256xi32>
      %18 = tpu.iota {dimensions = array<i32: 1>} : vector<256x256xi32>
      %19 = arith.cmpi eq, %17, %18 : vector<256x256xi32>
      %cst_7 = arith.constant 0.000000e+00 : f32
      %20 = vector.broadcast %cst_7 : f32 to vector<256x256xf32>
      %21 = arith.select %19, %12, %20 : vector<256x256xi1>, vector<256x256xf32>
      %22 = vector.shape_cast %21 : vector<256x256xf32> to vector<1x256x256xf32>
      %cst_8 = arith.constant dense<0.000000e+00> : vector<1xf32>
      %23 = vector.multi_reduction <add>, %22, %cst_8 [1, 2] : vector<1x256x256xf32> to vector<1xf32>
      %24 = vector.shape_cast %23 : vector<1xf32> to vector<1x1x1xf32>
      %25 = vector.extract %24[0, 0, 0] : f32 from vector<1x1x1xf32>
      %cst_9 = arith.constant 0.000000e+00 : f32
      %26 = vector.broadcast %cst_9 : f32 to vector<256x256xf32>
      %27 = arith.select %19, %5, %26 : vector<256x256xi1>, vector<256x256xf32>
      %28 = vector.shape_cast %27 : vector<256x256xf32> to vector<1x256x256xf32>
      %cst_10 = arith.constant dense<0.000000e+00> : vector<1xf32>
      %29 = vector.multi_reduction <add>, %28, %cst_10 [1, 2] : vector<1x256x256xf32> to vector<1xf32>
      %30 = vector.shape_cast %29 : vector<1xf32> to vector<1x1x1xf32>
      %31 = vector.extract %30[0, 0, 0] : f32 from vector<1x1x1xf32>
      %cst_11 = arith.constant 1.000000e+00 : f32
      %32 = arith.mulf %cst_11, %25 : f32
      %cst_12 = arith.constant 2.000000e+00 : f32
      %33 = arith.mulf %cst_12, %31 : f32
      %34 = arith.subf %32, %33 : f32
      %cst_13 = arith.constant 2.560000e+02 : f32
      %35 = arith.addf %34, %cst_13 : f32
      %36 = arith.subf %16, %25 : f32
      %cst_14 = arith.constant 1.000000e+00 : f32
      %37 = arith.mulf %cst_14, %36 : f32
      %c0_15 = arith.constant 0 : index
      %c0_16 = arith.constant 0 : index
      %38 = vector.load %arg4[%c0_15, %c0_16] : memref<8x128xf32, #tpu.memory_space<vmem>>, vector<8x128xf32>
      %cst_17 = arith.constant 0.00999999977 : f32
      %39 = arith.mulf %cst_17, %37 : f32
      %40 = arith.addf %35, %39 : f32
      %41 = vector.broadcast %40 : f32 to vector<8x128xf32>
      %42 = arith.addf %38, %41 : vector<8x128xf32>
      %c0_18 = arith.constant 0 : index
      %c0_19 = arith.constant 0 : index
      %43 = vector.load %arg4[%c0_18, %c0_19] : memref<8x128xf32, #tpu.memory_space<vmem>>, vector<8x128xf32>
      tpu.vector_store %arg4[%c0_18, %c0_19], %42 {strides = array<i32>} : memref<8x128xf32, #tpu.memory_space<vmem>>, vector<8x128xf32>,
    } else {
    }
    return
  }
  func.func @transform_0(%arg0: i32, %arg1: i32) -> (i32, i32) {
    %c0_i32 = arith.constant 0 : i32
    %c0_i32_0 = arith.constant 0 : i32
    return %c0_i32, %arg0 : i32, i32
  }
  func.func @transform_1(%arg0: i32, %arg1: i32) -> (i32, i32) {
    %c0_i32 = arith.constant 0 : i32
    %c0_i32_0 = arith.constant 0 : i32
    %c0_i32_1 = arith.constant 0 : i32
    return %c0_i32, %c0_i32_0 : i32, i32
  }
  func.func @transform_2(%arg0: i32, %arg1: i32) -> (i32, i32) {
    %c0_i32 = arith.constant 0 : i32
    %c0_i32_0 = arith.constant 0 : i32
    return %arg0, %c0_i32 : i32, i32
  }
}

</mosaic_0001>

<bundles_post_ra>
// kernel: _lambda_.2
= control target key start
LH: loop header
LB: loop body
LE: loop exit
PB: predicated region body
PF: predicated region fallthrough
CT: control target
= control target key end

     0   :  { %v17_v0 = vlaneseq  ;;  %s298_s0 = inlined_call_operand.vmem [shape: f32[16,256], index: 0, kind: input, shape index: {}]   ;;  %s299_s1 = inlined_call_operand.vmem [shape: f32[16,256], index: 1, kind: input, shape index: {}]   ;;  %s300_s2 = inlined_call_operand.vmem [shape: bf16[16,256], index: 2, kind: output, shape index: {0}]   ;;  %s301_s3 = inlined_call_operand.vmem [shape: bf16[16,256], index: 3, kind: output, shape index: {1}]  }
   0x1   :  { %v13_v2 = vld [vmem:[%s298_s0] sm:$0xff]  ;;  %v15_v3 = vld [vmem:[%s298_s0 + $0x10] sm:$0xff]  ;;  %v16_v4 = vld [vmem:[%s298_s0 + $0x18] sm:$0xff] }
   0x2   :  { %v18_v1 = vshrl.u32 %v17_v0, 7  ;;  %v100_v6 = vld [vmem:[%s299_s1 + $0x10] sm:$0xff]  ;;  %v101_v7 = vld [vmem:[%s299_s1 + $0x18] sm:$0xff]  ;;  %v14_v8 = vld [vmem:[%s298_s0 + $0x8] sm:$0xff] }
   0x3   :  { %v98_v9 = vld [vmem:[%s299_s1] sm:$0xff]  ;;  %v99_v10 = vld [vmem:[%s299_s1 + $0x8] sm:$0xff] }
   0x4   :  { %v19_v5 = vadd.s32 8, %v18_v1 }
   0x6   :  { %vm21_vm0 = vcmp.lt.s32.totalorder %v19_v5, 10 }
   0x7   :  { %v24_v11 = vsel %vm21_vm0, %v15_v3, 0.0  ;;  %v25_v12 = vsel %vm21_vm0, %v16_v4, 0.0  ;;  %v104_v13 = vsel %vm21_vm0, %v100_v6, 0.0  ;;  %v105_v14 = vsel %vm21_vm0, %v101_v7, 0.0 }
   0x8   :  { %v26_v15 = vadd.f32 %v24_v11, %v13_v2  ;;  %v33_v16 = vadd.f32 %v25_v12, %v14_v8  ;;  %v106_v17 = vadd.f32 %v104_v13, %v98_v9  ;;  %v113_v18 = vadd.f32 %v105_v14, %v99_v10 }
   0xa   :  { %v27_v19 = vrot.slane %v26_v15, 4  ;;  %v34_v20 = vrot.slane %v33_v16, 4  ;;  %v107_v21 = vrot.slane %v106_v17, 4  ;;  %v114_v22 = vrot.slane %v113_v18, 4 }
   0xc   :  { %v28_v23 = vadd.f32 %v27_v19, %v26_v15  ;;  %v35_v24 = vadd.f32 %v34_v20, %v33_v16  ;;  %v108_v25 = vadd.f32 %v107_v21, %v106_v17  ;;  %v115_v26 = vadd.f32 %v114_v22, %v113_v18 }
   0xe   :  { %v29_v27 = vrot.slane %v28_v23, 2  ;;  %v36_v28 = vrot.slane %v35_v24, 2  ;;  %v109_v29 = vrot.slane %v108_v25, 2  ;;  %v116_v30 = vrot.slane %v115_v26, 2 }
  0x10   :  { %v30_v31 = vadd.f32 %v29_v27, %v28_v23  ;;  %v37_v32 = vadd.f32 %v36_v28, %v35_v24  ;;  %v110_v33 = vadd.f32 %v109_v29, %v108_v25  ;;  %v117_v34 = vadd.f32 %v116_v30, %v115_v26 }
  0x12   :  { %v31_v35 = vrot.slane %v30_v31, 1  ;;  %v38_v36 = vrot.slane %v37_v32, 1  ;;  %v111_v37 = vrot.slane %v110_v33, 1  ;;  %v118_v38 = vrot.slane %v117_v34, 1 }
  0x14   :  { %v32_v39 = vadd.f32 %v31_v35, %v30_v31  ;;  %v39_v40 = vadd.f32 %v38_v36, %v37_v32  ;;  %v112_v41 = vadd.f32 %v111_v37, %v110_v33  ;;  %v119_v42 = vadd.f32 %v118_v38, %v117_v34 }
  0x16   :  { %v40_v43 = vmul.f32 0.1, %v32_v39  ;;  %v41_v44 = vmul.f32 0.1, %v39_v40  ;;  %v120_v45 = vmul.f32 0.1, %v112_v41 }
  0x17   :  { %v121_v46 = vmul.f32 0.1, %v119_v42 }
  0x18   :  { %v242_v47 = vsub.f32 %v13_v2, %v40_v43  ;;  %v244_v48 = vsub.f32 %v14_v8, %v41_v44  ;;  %v44_v49 = vsub.f32 %v24_v11, %v40_v43  ;;  %v45_v50 = vsub.f32 %v25_v12, %v41_v44 }
  0x19   :  { %v246_v51 = vsub.f32 %v98_v9, %v120_v45  ;;  %v248_v52 = vsub.f32 %v99_v10, %v121_v46  ;;  %v124_v53 = vsub.f32 %v104_v13, %v120_v45  ;;  %v125_v54 = vsub.f32 %v105_v14, %v121_v46 }
  0x1a   :  { %v251_v55 = vsel %vm21_vm0, %v44_v49, 0.0  ;;  %v254_v56 = vsel %vm21_vm0, %v45_v50, 0.0  ;;  %v50_v57 = vmul.f32 %v242_v47, %v242_v47  ;;  %v51_v58 = vmul.f32 %v244_v48, %v244_v48 }
  0x1b   :  { %v52_v59 = vmul.f32 %v251_v55, %v251_v55  ;;  %v53_v60 = vmul.f32 %v254_v56, %v254_v56  ;;  %v265_v61 = vsel %vm21_vm0, %v124_v53, 0.0  ;;  %v268_v62 = vsel %vm21_vm0, %v125_v54, 0.0 }
  0x1c   :  { %v130_v63 = vmul.f32 %v246_v51, %v246_v51  ;;  %v131_v0 = vmul.f32 %v248_v52, %v248_v52  ;;  %v132_v1 = vmul.f32 %v265_v61, %v265_v61  ;;  %v133_v2 = vmul.f32 %v268_v62, %v268_v62 }
  0x1d   :  { %v54_v3 = vadd.f32 %v52_v59, %v50_v57  ;;  %v61_v4 = vadd.f32 %v53_v60, %v51_v58 }
  0x1e   :  { %v134_v6 = vadd.f32 %v132_v1, %v130_v63  ;;  %v141_v7 = vadd.f32 %v133_v2, %v131_v0 }
  0x1f   :  { %v55_v8 = vrot.slane %v54_v3, 4  ;;  %v62_v5 = vrot.slane %v61_v4, 4 }
  0x20   :  { %v135_v9 = vrot.slane %v134_v6, 4  ;;  %v142_v10 = vrot.slane %v141_v7, 4 }
  0x21   :  { %v56_v11 = vadd.f32 %v55_v8, %v54_v3  ;;  %v63_v12 = vadd.f32 %v62_v5, %v61_v4 }
  0x22   :  { %v136_v13 = vadd.f32 %v135_v9, %v134_v6  ;;  %v143_v14 = vadd.f32 %v142_v10, %v141_v7 }
  0x23   :  { %v57_v15 = vrot.slane %v56_v11, 2  ;;  %v64_v16 = vrot.slane %v63_v12, 2 }
  0x24   :  { %v137_v17 = vrot.slane %v136_v13, 2  ;;  %v144_v18 = vrot.slane %v143_v14, 2 }
  0x25   :  { %v58_v19 = vadd.f32 %v57_v15, %v56_v11  ;;  %v65_v20 = vadd.f32 %v64_v16, %v63_v12 }
  0x26   :  { %v138_v21 = vadd.f32 %v137_v17, %v136_v13  ;;  %v145_v22 = vadd.f32 %v144_v18, %v143_v14 }
  0x27   :  { %v59_v23 = vrot.slane %v58_v19, 1  ;;  %v66_v24 = vrot.slane %v65_v20, 1 }
  0x28   :  { %v139_v25 = vrot.slane %v138_v21, 1  ;;  %v146_v26 = vrot.slane %v145_v22, 1 }
  0x29   :  { %v60_v27 = vadd.f32 %v59_v23, %v58_v19  ;;  %v67_v28 = vadd.f32 %v66_v24, %v65_v20 }
  0x2a   :  { %v140_v29 = vadd.f32 %v139_v25, %v138_v21  ;;  %v147_v30 = vadd.f32 %v146_v26, %v145_v22 }
  0x2b   :  { %v68_v31 = vmul.f32 0.11111111, %v60_v27  ;;  %v69_v32 = vmul.f32 0.11111111, %v67_v28 }
  0x2c   :  { %v148_v33 = vmul.f32 0.11111111, %v140_v29  ;;  %v149_v34 = vmul.f32 0.11111111, %v147_v30 }
  0x2d   :  { %186 = vrsqrt.f32 %v68_v31  ;;  %vm76_vm1 = vweird.f32 %v68_v31  ;;  %vm86_vm3 = vweird.f32 %v69_v32 }
  0x2e   :  { %188 = vrsqrt.f32 %v69_v32  ;;  %vm156_vm5 = vweird.f32 %v148_v33  ;;  %vm166_vm8 = vweird.f32 %v149_v34 }
  0x2f   :  { %190 = vrsqrt.f32 %v148_v33 }
  0x30   :  { %192 = vrsqrt.f32 %v149_v34 }
  0x33   :  { %v187_v35 = vpop.eup %186 }
  0x34   :  { %v189_v36 = vpop.eup %188  ;;  %v71_v37 = vmul.f32 %v187_v35, %v68_v31  ;;  %vm77_vm2 = vweird.f32 %v187_v35 }
  0x35   :  { %v191_v38 = vpop.eup %190  ;;  %v81_v39 = vmul.f32 %v189_v36, %v69_v32  ;;  %vm87_vm4 = vweird.f32 %v189_v36  ;;  %vm78_vm7 = vmor %vm76_vm1, %vm77_vm2 }
  0x36   :  { %v193_v40 = vpop.eup %192  ;;  %v72_v41 = vmul.f32 %v187_v35, %v71_v37  ;;  %v151_v42 = vmul.f32 %v191_v38, %v148_v33  ;;  %vm157_vm6 = vweird.f32 %v191_v38  ;;  %vm88_vm10 = vmor %vm86_vm3, %vm87_vm4 }
  0x37   :  { %v82_v43 = vmul.f32 %v189_v36, %v81_v39  ;;  %v161_v44 = vmul.f32 %v193_v40, %v149_v34  ;;  %vm167_vm9 = vweird.f32 %v193_v40  ;;  %vm158_vm11 = vmor %vm156_vm5, %vm157_vm6 }
  0x38   :  { %v73_v45 = vmul.f32 0.5, %v72_v41  ;;  %v152_v46 = vmul.f32 %v191_v38, %v151_v42  ;;  %vm168_vm12 = vmor %vm166_vm8, %vm167_vm9 }
  0x39   :  { %v83_v49 = vmul.f32 0.5, %v82_v43  ;;  %v162_v50 = vmul.f32 %v193_v40, %v161_v44 }
  0x3a   :  { %v74_v53 = vsub.f32 1.5, %v73_v45  ;;  %v153_v54 = vmul.f32 0.5, %v152_v46 }
  0x3b   :  { %v84_v57 = vsub.f32 1.5, %v83_v49  ;;  %v163_v58 = vmul.f32 0.5, %v162_v50 }
  0x3c   :  { %v75_v59 = vmul.f32 %v187_v35, %v74_v53  ;;  %v154_v60 = vsub.f32 1.5, %v153_v54 }
  0x3d   :  { %v85_v63 = vmul.f32 %v189_v36, %v84_v57  ;;  %v164_v0 = vsub.f32 1.5, %v163_v58 }
  0x3e   :  { %v79_v1 = vsel %vm78_vm7, %v187_v35, %v75_v59  ;;  %v155_v2 = vmul.f32 %v191_v38, %v154_v60 }
  0x3f   :  { %v89_v3 = vsel %vm88_vm10, %v189_v36, %v85_v63  ;;  %v90_v4 = vmul.f32 %v79_v1, %v242_v47  ;;  %v92_v6 = vmul.f32 %v79_v1, %v251_v55  ;;  %v165_v7 = vmul.f32 %v193_v40, %v164_v0 }
  0x40   :  { %v91_v8 = vmul.f32 %v89_v3, %v244_v48  ;;  %v93_v5 = vmul.f32 %v89_v3, %v254_v56  ;;  %v159_v9 = vsel %vm158_vm11, %v191_v38, %v155_v2 }
  0x41   :  { %v169_v10 = vsel %vm168_vm12, %v193_v40, %v165_v7  ;;  %v170_v11 = vmul.f32 %v159_v9, %v246_v51  ;;  %v172_v12 = vmul.f32 %v159_v9, %v265_v61 }
  0x42   :  { %v94_v13 = vpack.c.bf16 %v91_v8, %v90_v4  ;;  %v95_v14 = vpack.c.bf16 %v93_v5, %v92_v6  ;;  %v171_v15 = vmul.f32 %v169_v10, %v248_v52  ;;  %v173_v16 = vmul.f32 %v169_v10, %v268_v62 }
  0x44   :  { %96 = vst [vmem:[%s300_s2] sm:$0xff] %v94_v13  ;;  %v174_v47 = vpack.c.bf16 %v171_v15, %v170_v11  ;;  %v175_v48 = vpack.c.bf16 %v173_v16, %v172_v12 }
  0x45   :  { %97 = vst [vmem:[%s300_s2 + $0x8] sm:$0xff] %v95_v14 }
  0x46   :  { %176 = vst [vmem:[%s301_s3] sm:$0xff] %v174_v47 }
  0x47   :  { %177 = vst [vmem:[%s301_s3 + $0x8] sm:$0xff] %v175_v48 }

// kernel: _lambda_.3
= control target key start
LH: loop header
LB: loop body
LE: loop exit
PB: predicated region body
PF: predicated region fallthrough
CT: control target
= control target key end

     0   :  { %vm65_vm0 = vcmask 130048   ;;  %v577_v28 = vlaneseq  ;;  %s1540_s0 = inlined_call_operand.vmem [shape: bf16[16,256], index: 0, kind: input, shape index: {}]   ;;  %s1541_s1 = inlined_call_operand.vmem [shape: bf16[16,256], index: 1, kind: input, shape index: {}]   ;;  %s1542_s2 = inlined_call_operand.vmem [shape: f32[8,128], index: 2, kind: output, shape index: {}]  }
   0x1   :  { %v1011_v0 = vld [vmem:[%s1540_s0 + $0x4] sm:$0xf]  ;;  %v965_v1 = vld [vmem:[%s1540_s0] sm:$0xf]  ;;  %v967_v2 = vld [vmem:[%s1540_s0 + $0x8] sm:$0xf0] }
   0x2   :  { %v1012_v3 = vld [vmem:[%s1540_s0 + $0x4] sm:$0xf0]  ;;  %v970_v4 = vor.u32 %v1011_v0, %v967_v2  ;;  %v973_v5 = vld [vmem:[%s1541_s1] sm:$0xf]  ;;  %v1013_v9 = vld [vmem:[%s1541_s1 + $0x4] sm:$0xf] }
   0x3   :  { %v1014_v6 = vld [vmem:[%s1541_s1 + $0x4] sm:$0xf0]  ;;  %v966_v7 = vor.u32 %v1012_v3, %v965_v1  ;;  %v975_v10 = vld [vmem:[%s1541_s1 + $0x8] sm:$0xf0]  ;;  %v1096_v30 = vshrl.u32 %v577_v28, 7  ;;  %v1098_v32 = vand.u32 127, %v577_v28 }
   0x4   :  { %v974_v8 = vor.u32 %v1014_v6, %v973_v5  ;;  %v978_v11 = vor.u32 %v1013_v9, %v975_v10 }
   0x5   :  { %31 = vxpose.binary.xlu0.c.b16.start.end [1/2] (short) %v970_v4, %v966_v7, 128  ;;  %v1101_v33 = vadd.s32 8, %v1096_v30  ;;  %vm613_vm1 = vcmp.eq.s32.totalorder %v1096_v30, %v1098_v32  ;;  %v1114_v39 = vadd.s32 16, %v1096_v30  ;;  %v1124_v45 = vadd.s32 24, %v1096_v30 }
   0x6   :  { %121 = vmatpush.bf16.msra.mxu0 %v974_v8  ;;  %210 = vmatpush.bf16.msra.mxu1 %v978_v11  ;;  %v1134_v51 = vadd.s32 32, %v1096_v30  ;;  %v1148_v60 = vadd.s32 40, %v1096_v30  ;;  %v1164_v7 = vadd.s32 48, %v1096_v30 }
   0x7   :  { %1015 = vmatpush.bf16.msra.mxu2 %v974_v8  ;;  %1016 = vmatpush.bf16.msra.mxu3 %v978_v11  ;;  %vm615_vm2 = vcmp.eq.s32.totalorder %v1101_v33, %v1098_v32  ;;  %vm617_vm3 = vcmp.eq.s32.totalorder %v1114_v39, %v1098_v32  ;;  %vm619_vm4 = vcmp.eq.s32.totalorder %v1124_v45, %v1098_v32  ;;  %v586_v39 = vadd.s32 64, %v1096_v30 }
   0x8   :  { %vm621_vm5 = vcmp.eq.s32.totalorder %v1134_v51, %v1098_v32  ;;  %vm623_vm6 = vcmp.eq.s32.totalorder %v1148_v60, %v1098_v32  ;;  %vm625_vm7 = vcmp.eq.s32.totalorder %v1164_v7, %v1098_v32 }
   0x9   :  { %vm629_vm9 = vcmp.eq.s32.totalorder %v586_v39, %v1098_v32  ;;  %v592_v39 = vadd.s32 112, %v1096_v30 }
   0xb   :  { %vm641_vm15 = vcmp.eq.s32.totalorder %v592_v39, %v1098_v32 }
  0xb1   :  { %v39_v12 = vpop.trf.xlu0 }
  0xb2   :  { %979 = vmatmul.msk.bf16.vlgmr.msra.gmra.mxu0 %vm65_vm0, %v39_v12  ;;  %995 = vmatmul.msk.bf16.vlgmr.msra.gmra.mxu1 %vm65_vm0, %v39_v12 }
  0xb9   :  { %v40_v13 = vpop.trf.xlu0 }
  0xba   :  { %987 = vmatmul.msk.bf16.vlgmr.msra.gmra.mxu2 %vm65_vm0, %v40_v13  ;;  %1003 = vmatmul.msk.bf16.vlgmr.msra.gmra.mxu3 %vm65_vm0, %v40_v13 }
  0xc1   :  { %v41_v14 = vpop.trf.xlu0 }
  0xc2   :  { %980 = vmatmul.msk.bf16.gmra.mxu0 %vm65_vm0, %v41_v14  ;;  %996 = vmatmul.msk.bf16.gmra.mxu1 %vm65_vm0, %v41_v14 }
  0xc9   :  { %v42_v15 = vpop.trf.xlu0 }
  0xca   :  { %988 = vmatmul.msk.bf16.gmra.mxu2 %vm65_vm0, %v42_v15  ;;  %1004 = vmatmul.msk.bf16.gmra.mxu3 %vm65_vm0, %v42_v15 }
  0xd1   :  { %v43_v16 = vpop.trf.xlu0 }
  0xd2   :  { %981 = vmatmul.msk.bf16.gmra.mxu0 %vm65_vm0, %v43_v16  ;;  %997 = vmatmul.msk.bf16.gmra.mxu1 %vm65_vm0, %v43_v16 }
  0xd9   :  { %v44_v17 = vpop.trf.xlu0 }
  0xda   :  { %989 = vmatmul.msk.bf16.gmra.mxu2 %vm65_vm0, %v44_v17  ;;  %1005 = vmatmul.msk.bf16.gmra.mxu3 %vm65_vm0, %v44_v17 }
  0xe1   :  { %v45_v18 = vpop.trf.xlu0 }
  0xe2   :  { %982 = vmatmul.msk.bf16.gmra.mxu0 %vm65_vm0, %v45_v18  ;;  %998 = vmatmul.msk.bf16.gmra.mxu1 %vm65_vm0, %v45_v18 }
  0xe9   :  { %v46_v19 = vpop.trf.xlu0 }
  0xea   :  { %990 = vmatmul.msk.bf16.gmra.mxu2 %vm65_vm0, %v46_v19  ;;  %1006 = vmatmul.msk.bf16.gmra.mxu3 %vm65_vm0, %v46_v19 }
  0xf1   :  { %v47_v20 = vpop.trf.xlu0 }
  0xf2   :  { %983 = vmatmul.msk.bf16.gmra.mxu0 %vm65_vm0, %v47_v20  ;;  %999 = vmatmul.msk.bf16.gmra.mxu1 %vm65_vm0, %v47_v20 }
  0xf9   :  { %v48_v21 = vpop.trf.xlu0 }
  0xfa   :  { %991 = vmatmul.msk.bf16.gmra.mxu2 %vm65_vm0, %v48_v21  ;;  %1007 = vmatmul.msk.bf16.gmra.mxu3 %vm65_vm0, %v48_v21 }
 0x101   :  { %v49_v22 = vpop.trf.xlu0 }
 0x102   :  { %984 = vmatmul.msk.bf16.gmra.mxu0 %vm65_vm0, %v49_v22  ;;  %1000 = vmatmul.msk.bf16.gmra.mxu1 %vm65_vm0, %v49_v22 }
 0x109   :  { %v50_v23 = vpop.trf.xlu0 }
 0x10a   :  { %992 = vmatmul.msk.bf16.gmra.mxu2 %vm65_vm0, %v50_v23  ;;  %1008 = vmatmul.msk.bf16.gmra.mxu3 %vm65_vm0, %v50_v23 }
 0x111   :  { %v51_v24 = vpop.trf.xlu0 }
 0x112   :  { %985 = vmatmul.msk.bf16.gmra.mxu0 %vm65_vm0, %v51_v24  ;;  %1001 = vmatmul.msk.bf16.gmra.mxu1 %vm65_vm0, %v51_v24 }
 0x119   :  { %v52_v25 = vpop.trf.xlu0 }
 0x11a   :  { %993 = vmatmul.msk.bf16.gmra.mxu2 %vm65_vm0, %v52_v25  ;;  %1009 = vmatmul.msk.bf16.gmra.mxu3 %vm65_vm0, %v52_v25 }
 0x121   :  { %v53_v26 = vpop.trf.xlu0 }
 0x122   :  { %986 = vmatmul.msk.bf16.gmra.mxu0 %vm65_vm0, %v53_v26  ;;  %1002 = vmatmul.msk.bf16.gmra.mxu1 %vm65_vm0, %v53_v26 }
 0x129   :  { %v54_v27 = vpop.trf.xlu0 }
 0x12a   :  { %1010 = vmatmul.msk.bf16.gmra.mxu3 %vm65_vm0, %v54_v27  ;;  %994 = vmatmul.msk.bf16.gmra.mxu2 %vm65_vm0, %v54_v27 }
 0x12f   :  { %v123_v29 = vpop.f32.mrf.mxu0  ;;  %v212_v31 = vpop.f32.mrf.mxu1 }
 0x130   :  { %v813_v36 = vsel %vm613_vm1, %v123_v29, 0.0  ;;  %v1140_v55 = vmul.f32 %v123_v29, %v123_v29  ;;  %v442_v56 = vmul.f32 %v212_v31, %v212_v31 }
 0x132   :  { %v505_v62 = vadd.f32 %v442_v56, %v1140_v55 }
 0x137   :  { %v125_v34 = vpop.f32.mrf.mxu0  ;;  %v214_v35 = vpop.f32.mrf.mxu1 }
 0x138   :  { %v815_v37 = vsel %vm615_vm2, %v125_v34, 0.0  ;;  %v1150_v61 = vmul.f32 %v125_v34, %v125_v34  ;;  %v444_v3 = vmul.f32 %v214_v35, %v214_v35 }
 0x139   :  { %v878_v38 = vadd.f32 %v815_v37, %v813_v36 }
 0x13a   :  { %v506_v0 = vadd.f32 %v505_v62, %v1150_v61 }
 0x13c   :  { %v507_v8 = vadd.f32 %v506_v0, %v444_v3 }
 0x13d   :  { %v1116_v40 = vpop.f32.mrf.mxu3  ;;  %v1142_v57 = vpop.f32.mrf.mxu2 }
 0x13f   :  { %v128_v41 = vpop.f32.mrf.mxu0  ;;  %v217_v42 = vpop.f32.mrf.mxu1 }
 0x140   :  { %v817_v43 = vsel %vm617_vm3, %v128_v41, 0.0  ;;  %v1158_v4 = vmul.f32 %v128_v41, %v128_v41  ;;  %v446_v12 = vmul.f32 %v217_v42, %v217_v42 }
 0x141   :  { %v880_v44 = vadd.f32 %v878_v38, %v817_v43 }
 0x142   :  { %v508_v10 = vadd.f32 %v507_v8, %v1158_v4 }
 0x144   :  { %v509_v16 = vadd.f32 %v508_v10, %v446_v12 }
 0x145   :  { %v1126_v46 = vpop.f32.mrf.mxu3  ;;  %v1166_v9 = vpop.f32.mrf.mxu2 }
 0x147   :  { %v130_v47 = vpop.f32.mrf.mxu0  ;;  %v219_v48 = vpop.f32.mrf.mxu1 }
 0x148   :  { %v819_v49 = vsel %vm619_vm4, %v130_v47, 0.0  ;;  %v1173_v13 = vmul.f32 %v130_v47, %v130_v47  ;;  %v448_v20 = vmul.f32 %v219_v48, %v219_v48 }
 0x149   :  { %v882_v50 = vadd.f32 %v880_v44, %v819_v49 }
 0x14a   :  { %v510_v19 = vadd.f32 %v509_v16, %v1173_v13 }
 0x14c   :  { %v511_v24 = vadd.f32 %v510_v19, %v448_v20 }
 0x14d   :  { %v1136_v52 = vpop.f32.mrf.mxu3  ;;  %v1181_v21 = vpop.f32.mrf.mxu2 }
 0x14f   :  { %v133_v53 = vpop.f32.mrf.mxu0  ;;  %v222_v54 = vpop.f32.mrf.mxu1 }
 0x150   :  { %v821_v58 = vsel %vm621_vm5, %v133_v53, 0.0  ;;  %v449_v22 = vmul.f32 %v133_v53, %v133_v53  ;;  %v450_v28 = vmul.f32 %v222_v54, %v222_v54 }
 0x151   :  { %v884_v59 = vadd.f32 %v882_v50, %v821_v58 }
 0x152   :  { %v512_v27 = vadd.f32 %v511_v24, %v449_v22 }
 0x154   :  { %v513_v31 = vadd.f32 %v512_v27, %v450_v28 }
 0x155   :  { %v1153_v63 = vpop.f32.mrf.mxu3  ;;  %v1189_v35 = vpop.f32.mrf.mxu2 }
 0x157   :  { %v135_v1 = vpop.f32.mrf.mxu0  ;;  %v224_v2 = vpop.f32.mrf.mxu1 }
 0x158   :  { %v823_v5 = vsel %vm623_vm6, %v135_v1, 0.0  ;;  %v451_v29 = vmul.f32 %v135_v1, %v135_v1  ;;  %v452_v41 = vmul.f32 %v224_v2, %v224_v2 }
 0x159   :  { %v886_v6 = vadd.f32 %v884_v59, %v823_v5 }
 0x15a   :  { %v514_v36 = vadd.f32 %v513_v31, %v451_v29  ;;  %v677_v31 = vsel %vm613_vm1, %v1140_v55, 0.0  ;;  %v683_v55 = vsel %vm619_vm4, %v1173_v13, 0.0  ;;  %v687_v45 = vsel %vm623_vm6, %v451_v29, 0.0 }
 0x15b   :  { %v589_v29 = vadd.s32 88, %v1096_v30 }
 0x15c   :  { %v515_v43 = vadd.f32 %v514_v36, %v452_v41  ;;  %v681_v36 = vsel %vm617_vm3, %v1158_v4, 0.0 }
 0x15d   :  { %v1169_v11 = vpop.f32.mrf.mxu3  ;;  %v1199_v54 = vpop.f32.mrf.mxu2  ;;  %vm635_vm12 = vcmp.eq.s32.totalorder %v589_v29, %v1098_v32 }
 0x15f   :  { %v138_v14 = vpop.f32.mrf.mxu0  ;;  %v227_v15 = vpop.f32.mrf.mxu1 }
 0x160   :  { %v825_v17 = vsel %vm625_vm7, %v138_v14, 0.0  ;;  %v453_v42 = vmul.f32 %v138_v14, %v138_v14  ;;  %v454_v48 = vmul.f32 %v227_v15, %v227_v15 }
 0x161   :  { %v1178_v18 = vadd.f32 %v886_v6, %v825_v17 }
 0x162   :  { %v516_v44 = vadd.f32 %v515_v43, %v453_v42  ;;  %v689_v51 = vsel %vm625_vm7, %v453_v42, 0.0 }
 0x164   :  { %v517_v56 = vadd.f32 %v516_v44, %v454_v48 }
 0x165   :  { %v1183_v23 = vpop.f32.mrf.mxu3  ;;  %v1207_v6 = vpop.f32.mrf.mxu2 }
 0x167   :  { %v1185_v25 = vpop.f32.mrf.mxu0  ;;  %v229_v26 = vpop.f32.mrf.mxu1 }
 0x168   :  { %v455_v49 = vmul.f32 %v1185_v25, %v1185_v25  ;;  %v456_v59 = vmul.f32 %v229_v26, %v229_v26  ;;  %v679_v26 = vsel %vm615_vm2, %v1150_v61, 0.0  ;;  %v585_v61 = vadd.s32 56, %v1096_v30 }
 0x169   :  { %v742_v33 = vadd.f32 %v679_v26, %v677_v31 }
 0x16a   :  { %v518_v58 = vadd.f32 %v517_v56, %v455_v49  ;;  %v685_v56 = vsel %vm621_vm5, %v449_v22, 0.0  ;;  %vm627_vm8 = vcmp.eq.s32.totalorder %v585_v61, %v1098_v32 }
 0x16b   :  { %v827_v22 = vsel %vm627_vm8, %v1185_v25, 0.0 }
 0x16c   :  { %v519_v1 = vadd.f32 %v518_v58, %v456_v59  ;;  %v890_v25 = vadd.f32 %v1178_v18, %v827_v22  ;;  %v591_v18 = vadd.s32 104, %v1096_v30 }
 0x16d   :  { %v1187_v34 = vpop.f32.mrf.mxu3  ;;  %v1223_v27 = vpop.f32.mrf.mxu2 }
 0x16e   :  { %vm639_vm14 = vcmp.eq.s32.totalorder %v591_v18, %v1098_v32 }
 0x16f   :  { %v1191_v37 = vpop.f32.mrf.mxu0  ;;  %v232_v38 = vpop.f32.mrf.mxu1 }
 0x170   :  { %v457_v62 = vmul.f32 %v1191_v37, %v1191_v37  ;;  %v458_v8 = vmul.f32 %v232_v38, %v232_v38  ;;  %v829_v7 = vsel %vm629_vm9, %v1191_v37, 0.0 }
 0x171   :  { %v892_v61 = vadd.f32 %v890_v25, %v829_v7  ;;  %v596_v7 = vadd.s32 144, %v1096_v30 }
 0x172   :  { %v520_v5 = vadd.f32 %v519_v1, %v457_v62  ;;  %v587_v1 = vadd.s32 72, %v1096_v30  ;;  %v693_v31 = vsel %vm629_vm9, %v457_v62, 0.0 }
 0x174   :  { %v521_v12 = vadd.f32 %v520_v5, %v458_v8  ;;  %v588_v8 = vadd.s32 80, %v1096_v30  ;;  %vm631_vm10 = vcmp.eq.s32.totalorder %v587_v1, %v1098_v32 }
 0x175   :  { %v1193_v47 = vpop.f32.mrf.mxu3 }
 0x176   :  { %vm633_vm11 = vcmp.eq.s32.totalorder %v588_v8, %v1098_v32 }
 0x177   :  { %v1197_v50 = vpop.f32.mrf.mxu0  ;;  %v234_v53 = vpop.f32.mrf.mxu1 }
 0x178   :  { %v459_v10 = vmul.f32 %v1197_v50, %v1197_v50  ;;  %v460_v19 = vmul.f32 %v234_v53, %v234_v53  ;;  %v744_v53 = vadd.f32 %v742_v33, %v681_v36  ;;  %v831_v36 = vsel %vm631_vm10, %v1197_v50, 0.0 }
 0x17a   :  { %v522_v14 = vadd.f32 %v521_v12, %v459_v10  ;;  %v746_v59 = vadd.f32 %v744_v53, %v683_v55  ;;  %v1263_v12 = vpop.f32.mrf.mxu2  ;;  %v1285_v55 = vadd.s32 128, %v1096_v30  ;;  %v695_v62 = vsel %vm631_vm10, %v459_v10, 0.0 }
 0x17b   :  { %v894_v53 = vadd.f32 %v892_v61, %v831_v36 }
 0x17c   :  { %v523_v24 = vadd.f32 %v522_v14, %v460_v19  ;;  %v748_v5 = vadd.f32 %v746_v59, %v685_v56  ;;  %v1295_v56 = vadd.s32 128, %v1098_v32 }
 0x17d   :  { %v1203_v0 = vpop.f32.mrf.mxu3 }
 0x17e   :  { %v750_v60 = vadd.f32 %v748_v5, %v687_v45  ;;  %vm646_vm0 = vcmp.eq.s32.totalorder %v1285_v55, %v1295_v56  ;;  %vm650_vm3 = vcmp.eq.s32.totalorder %v596_v7, %v1295_v56 }
 0x17f   :  { %v1205_v2 = vpop.f32.mrf.mxu0  ;;  %v237_v3 = vpop.f32.mrf.mxu1  ;;  %v846_v39 = vsel %vm646_vm0, %v1116_v40, 0.0 }
 0x180   :  { %v1217_v20 = vmul.f32 %v1205_v2, %v1205_v2  ;;  %v462_v38 = vmul.f32 %v237_v3, %v237_v3  ;;  %v752_v26 = vadd.f32 %v750_v60, %v689_v51  ;;  %v833_v50 = vsel %vm633_vm11, %v1205_v2, 0.0 }
 0x181   :  { %v1304_v2 = vadd.s32 136, %v1096_v30  ;;  %v896_v45 = vadd.f32 %v894_v53, %v833_v50 }
 0x182   :  { %v524_v28 = vadd.f32 %v523_v24, %v1217_v20  ;;  %v691_v24 = vsel %vm627_vm8, %v455_v49, 0.0 }
 0x183   :  { %v754_v33 = vadd.f32 %v752_v26, %v691_v24  ;;  %v593_v24 = vadd.s32 120, %v1096_v30  ;;  %vm648_vm2 = vcmp.eq.s32.totalorder %v1304_v2, %v1295_v56 }
 0x184   :  { %v525_v48 = vadd.f32 %v524_v28, %v462_v38  ;;  %v590_v28 = vadd.s32 96, %v1096_v30 }
 0x185   :  { %v1211_v15 = vpop.f32.mrf.mxu3  ;;  %vm643_vm1 = vcmp.eq.s32.totalorder %v593_v24, %v1098_v32 }
 0x186   :  { %vm637_vm13 = vcmp.eq.s32.totalorder %v590_v28, %v1098_v32  ;;  %v848_v32 = vsel %vm648_vm2, %v1126_v46, 0.0 }
 0x187   :  { %v1213_v16 = vpop.f32.mrf.mxu0  ;;  %v239_v17 = vpop.f32.mrf.mxu1 }
 0x188   :  { %v1236_v41 = vmul.f32 %v1213_v16, %v1213_v16  ;;  %v464_v13 = vmul.f32 %v239_v17, %v239_v17  ;;  %v835_v10 = vsel %vm635_vm12, %v1213_v16, 0.0  ;;  %v1312_v16 = vpop.f32.mrf.mxu2 }
 0x189   :  { %v898_v60 = vadd.f32 %v896_v45, %v835_v10  ;;  %v599_v10 = vadd.s32 168, %v1096_v30  ;;  %v476_v45 = vmul.f32 %v1126_v46, %v1126_v46  ;;  %v480_v46 = vmul.f32 %v1153_v63, %v1153_v63 }
 0x18a   :  { %v526_v58 = vadd.f32 %v525_v48, %v1236_v41  ;;  %v756_v48 = vadd.f32 %v754_v33, %v693_v31  ;;  %v699_v51 = vsel %vm635_vm12, %v1236_v41, 0.0  ;;  %v598_v33 = vadd.s32 160, %v1096_v30 }
 0x18b   :  { %vm656_vm6 = vcmp.eq.s32.totalorder %v599_v10, %v1295_v56  ;;  %v712_v55 = vsel %vm648_vm2, %v476_v45, 0.0 }
 0x18c   :  { %v527_v14 = vadd.f32 %v526_v58, %v464_v13  ;;  %v697_v58 = vsel %vm633_vm11, %v1217_v20, 0.0  ;;  %v758_v1 = vadd.f32 %v756_v48, %v695_v62  ;;  %vm654_vm5 = vcmp.eq.s32.totalorder %v598_v33, %v1295_v56 }
 0x18d   :  { %v1244_v4 = vpop.f32.mrf.mxu3 }
 0x18f   :  { %v153_v43 = vpop.f32.mrf.mxu0  ;;  %v242_v44 = vpop.f32.mrf.mxu1 }
 0x190   :  { %v465_v3 = vmul.f32 %v153_v43, %v153_v43  ;;  %v466_v49 = vmul.f32 %v242_v44, %v242_v44  ;;  %v837_v20 = vsel %vm637_vm13, %v153_v43, 0.0  ;;  %v1322_v43 = vadd.s32 152, %v1096_v30 }
 0x191   :  { %v900_v26 = vadd.f32 %v898_v60, %v837_v20  ;;  %v473_v20 = vmul.f32 %v1142_v57, %v1142_v57  ;;  %v478_v60 = vmul.f32 %v1136_v52, %v1136_v52  ;;  %v600_v57 = vadd.s32 176, %v1096_v30 }
 0x192   :  { %v528_v42 = vadd.f32 %v527_v14, %v465_v3  ;;  %v760_v14 = vadd.f32 %v758_v1, %v697_v58  ;;  %vm652_vm4 = vcmp.eq.s32.totalorder %v1322_v43, %v1295_v56 }
 0x193   :  { %v714_v2 = vsel %vm650_vm3, %v478_v60, 0.0  ;;  %vm658_vm7 = vcmp.eq.s32.totalorder %v600_v57, %v1295_v56  ;;  %v716_v7 = vsel %vm652_vm4, %v480_v46, 0.0 }
 0x194   :  { %v529_v44 = vadd.f32 %v528_v42, %v466_v49  ;;  %v701_v42 = vsel %vm637_vm13, %v465_v3, 0.0 }
 0x195   :  { %v1281_v37 = vpop.f32.mrf.mxu3 }
 0x197   :  { %v155_v17 = vpop.f32.mrf.mxu0  ;;  %v244_v19 = vpop.f32.mrf.mxu1 }
 0x198   :  { %v467_v38 = vmul.f32 %v155_v17, %v155_v17  ;;  %v468_v8 = vmul.f32 %v244_v19, %v244_v19  ;;  %v839_v41 = vsel %vm639_vm14, %v155_v17, 0.0  ;;  %v762_v19 = vadd.f32 %v760_v14, %v699_v51 }
 0x199   :  { %v902_v28 = vadd.f32 %v900_v26, %v839_v41  ;;  %v475_v26 = vmul.f32 %v1166_v9, %v1166_v9  ;;  %v477_v9 = vmul.f32 %v1181_v21, %v1181_v21  ;;  %v602_v21 = vadd.s32 192, %v1096_v30 }
 0x19a   :  { %v530_v59 = vadd.f32 %v529_v44, %v467_v38  ;;  %v703_v25 = vsel %vm639_vm14, %v467_v38, 0.0  ;;  %v764_v3 = vadd.f32 %v762_v19, %v701_v42  ;;  %v474_v44 = vmul.f32 %v1116_v40, %v1116_v40 }
 0x19b   :  { %vm662_vm9 = vcmp.eq.s32.totalorder %v602_v21, %v1295_v56 }
 0x19c   :  { %v531_v29 = vadd.f32 %v530_v59, %v468_v8  ;;  %v766_v61 = vadd.f32 %v764_v3, %v703_v25  ;;  %v1357_v8 = vpop.f32.mrf.mxu2  ;;  %v710_v14 = vsel %vm646_vm0, %v474_v44, 0.0  ;;  %v601_v25 = vadd.s32 184, %v1096_v30 }
 0x19d   :  { %v1330_v49 = vpop.f32.mrf.mxu3 }
 0x19e   :  { %vm660_vm8 = vcmp.eq.s32.totalorder %v601_v25, %v1295_v56  ;;  %v1470_v25 = vmul.f32 %v1244_v4, %v1244_v4 }
 0x19f   :  { %v158_v13 = vpop.f32.mrf.mxu0  ;;  %v247_v5 = vpop.f32.mrf.mxu1 }
 0x1a0   :  { %v469_v22 = vmul.f32 %v158_v13, %v158_v13  ;;  %v841_v36 = vsel %vm641_vm15, %v158_v13, 0.0  ;;  %v470_v38 = vmul.f32 %v247_v5, %v247_v5 }
 0x1a1   :  { %v904_v18 = vadd.f32 %v902_v28, %v841_v36  ;;  %v1391_v28 = vmul.f32 %v1169_v11, %v1169_v11 }
 0x1a2   :  { %v532_v31 = vadd.f32 %v531_v29, %v469_v22  ;;  %v705_v17 = vsel %vm641_vm15, %v469_v22, 0.0  ;;  %v850_v29 = vsel %vm650_vm3, %v1136_v52, 0.0  ;;  %v852_v52 = vsel %vm652_vm4, %v1153_v63, 0.0 }
 0x1a3   :  { %v768_v59 = vadd.f32 %v766_v61, %v705_v17  ;;  %v854_v63 = vsel %vm654_vm5, %v1169_v11, 0.0  ;;  %v718_v43 = vsel %vm654_vm5, %v1391_v28, 0.0  ;;  %v1416_v11 = vmul.f32 %v1187_v34, %v1187_v34 }
 0x1a4   :  { %v533_v48 = vadd.f32 %v532_v31, %v470_v38 }
 0x1a5   :  { %v1381_v31 = vpop.f32.mrf.mxu3  ;;  %v722_v10 = vsel %vm658_vm7, %v1416_v11, 0.0 }
 0x1a7   :  { %v160_v62 = vpop.f32.mrf.mxu0  ;;  %v249_v50 = vpop.f32.mrf.mxu1 }
 0x1a8   :  { %v471_v53 = vmul.f32 %v160_v62, %v160_v62  ;;  %v843_v58 = vsel %vm643_vm1, %v160_v62, 0.0  ;;  %v472_v51 = vmul.f32 %v249_v50, %v249_v50 }
 0x1a9   :  { %v906_v1 = vadd.f32 %v904_v18, %v843_v58  ;;  %v1404_v18 = vmul.f32 %v1183_v23, %v1183_v23  ;;  %v479_v58 = vmul.f32 %v1189_v35, %v1189_v35  ;;  %v604_v35 = vadd.s32 208, %v1096_v30 }
 0x1aa   :  { %v534_v13 = vadd.f32 %v533_v48, %v471_v53  ;;  %v707_v5 = vsel %vm643_vm1, %v471_v53, 0.0  ;;  %v856_v48 = vsel %vm656_vm6, %v1183_v23, 0.0  ;;  %v858_v23 = vsel %vm658_vm7, %v1187_v34, 0.0 }
 0x1ab   :  { %v770_v40 = vadd.f32 %v768_v59, %v707_v5  ;;  %v909_v22 = vadd.f32 %v906_v1, %v846_v39  ;;  %v603_v39 = vadd.s32 200, %v1096_v30  ;;  %v1421_v59 = vpop.f32.mrf.mxu2  ;;  %v720_v33 = vsel %vm656_vm6, %v1404_v18, 0.0 }
 0x1ac   :  { %v535_v24 = vadd.f32 %v534_v13, %v472_v51  ;;  %v860_v34 = vsel %vm660_vm8, %v1193_v47, 0.0  ;;  %vm666_vm11 = vcmp.eq.s32.totalorder %v604_v35, %v1295_v56 }
 0x1ad   :  { %v773_v42 = vadd.f32 %v770_v40, %v710_v14  ;;  %v911_v41 = vadd.f32 %v909_v22, %v848_v32  ;;  %v1435_v40 = vpop.f32.mrf.mxu3  ;;  %v1445_v22 = vmul.f32 %v1203_v0, %v1203_v0  ;;  %vm664_vm10 = vcmp.eq.s32.totalorder %v603_v39, %v1295_v56 }
 0x1ae   :  { %v536_v19 = vadd.f32 %v535_v24, %v473_v20  ;;  %v605_v32 = vadd.s32 216, %v1096_v30  ;;  %v609_v39 = vadd.s32 248, %v1096_v30 }
 0x1af   :  { %v775_v36 = vadd.f32 %v773_v42, %v712_v55  ;;  %v913_v3 = vadd.f32 %v911_v41, %v850_v29  ;;  %v862_v41 = vsel %vm662_vm9, %v1203_v0, 0.0  ;;  %v864_v0 = vsel %vm664_vm10, %v1211_v15, 0.0 }
 0x1b0   :  { %v537_v17 = vadd.f32 %v536_v19, %v474_v44  ;;  %vm668_vm12 = vcmp.eq.s32.totalorder %v605_v32, %v1295_v56  ;;  %vm676_vm0 = vcmp.eq.s32.totalorder %v609_v39, %v1295_v56 }
 0x1b1   :  { %v777_v38 = vadd.f32 %v775_v36, %v714_v2  ;;  %v915_v61 = vadd.f32 %v913_v3, %v852_v52  ;;  %v866_v52 = vsel %vm666_vm11, %v1244_v4, 0.0  ;;  %v498_v4 = vmul.f32 %v1330_v49, %v1330_v49 }
 0x1b2   :  { %v538_v62 = vadd.f32 %v537_v17, %v475_v26  ;;  %v726_v26 = vsel %vm662_vm9, %v1445_v22, 0.0  ;;  %v868_v21 = vsel %vm668_vm12, %v1281_v37, 0.0 }
 0x1b3   :  { %v779_v50 = vadd.f32 %v777_v38, %v716_v7  ;;  %v917_v44 = vadd.f32 %v915_v61, %v854_v63  ;;  %v483_v7 = vmul.f32 %v1207_v6, %v1207_v6  ;;  %v730_v63 = vsel %vm666_vm11, %v1470_v25, 0.0 }
 0x1b4   :  { %v539_v53 = vadd.f32 %v538_v62, %v476_v45  ;;  %v1431_v45 = vmul.f32 %v1193_v47, %v1193_v47  ;;  %v1457_v47 = vmul.f32 %v1211_v15, %v1211_v15  ;;  %v1481_v15 = vmul.f32 %v1281_v37, %v1281_v37 }
 0x1b5   :  { %v781_v1 = vadd.f32 %v779_v50, %v718_v43  ;;  %v919_v13 = vadd.f32 %v917_v44, %v856_v48  ;;  %v607_v50 = vadd.s32 232, %v1096_v30  ;;  %v608_v44 = vadd.s32 240, %v1096_v30  ;;  %v289_v43 = vpop.f32.mrf.mxu3 }
 0x1b6   :  { %v540_v5 = vadd.f32 %v539_v53, %v477_v9  ;;  %v724_v57 = vsel %vm660_vm8, %v1431_v45, 0.0  ;;  %v728_v2 = vsel %vm664_vm10, %v1457_v47, 0.0  ;;  %v190_v9 = vpop.f32.mrf.mxu2  ;;  %v732_v6 = vsel %vm668_vm12, %v1481_v15, 0.0 }
 0x1b7   :  { %v783_v51 = vadd.f32 %v781_v1, %v720_v33  ;;  %v921_v20 = vadd.f32 %v919_v13, %v858_v23  ;;  %v500_v53 = vmul.f32 %v1381_v31, %v1381_v31  ;;  %v485_v13 = vmul.f32 %v1223_v27, %v1223_v27 }
 0x1b8   :  { %v541_v14 = vadd.f32 %v540_v5, %v478_v60  ;;  %v481_v60 = vmul.f32 %v1199_v54, %v1199_v54  ;;  %v504_v5 = vmul.f32 %v289_v43, %v289_v43  ;;  %vm672_vm14 = vcmp.eq.s32.totalorder %v607_v50, %v1295_v56 }
 0x1b9   :  { %v785_v24 = vadd.f32 %v783_v51, %v722_v10  ;;  %v923_v42 = vadd.f32 %v921_v20, %v860_v34  ;;  %vm674_vm15 = vcmp.eq.s32.totalorder %v608_v44, %v1295_v56  ;;  %v736_v20 = vsel %vm672_vm14, %v500_v53, 0.0 }
 0x1ba   :  { %v542_v55 = vadd.f32 %v541_v14, %v479_v58  ;;  %v740_v32 = vsel %vm676_vm0, %v504_v5, 0.0 }
 0x1bb   :  { %v925_v29 = vadd.f32 %v923_v42, %v862_v41  ;;  %v787_v19 = vadd.f32 %v785_v24, %v724_v57 }
 0x1bc   :  { %v543_v36 = vadd.f32 %v542_v55, %v480_v46  ;;  %v606_v46 = vadd.s32 224, %v1096_v30 }
 0x1bd   :  { %v927_v54 = vadd.f32 %v925_v29, %v864_v0  ;;  %v789_v3 = vadd.f32 %v787_v19, %v726_v26  ;;  %v874_v29 = vsel %vm674_vm15, %v1435_v40, 0.0  ;;  %v491_v26 = vmul.f32 %v1357_v8, %v1357_v8 }
 0x1be   :  { %v544_v17 = vadd.f32 %v543_v36, %v481_v60  ;;  %vm670_vm13 = vcmp.eq.s32.totalorder %v606_v46, %v1295_v56  ;;  %v193_v24 = vpop.f32.mrf.mxu2  ;;  %v489_v60 = vmul.f32 %v1312_v16, %v1312_v16 }
 0x1bf   :  { %v929_v38 = vadd.f32 %v927_v54, %v866_v52  ;;  %v791_v61 = vadd.f32 %v789_v3, %v728_v2  ;;  %v734_v33 = vsel %vm670_vm13, %v498_v4, 0.0  ;;  %v870_v51 = vsel %vm670_vm13, %v1330_v49, 0.0 }
 0x1c0   :  { %v545_v62 = vadd.f32 %v544_v17, %v1391_v28  ;;  %v502_v28 = vmul.f32 %v1435_v40, %v1435_v40  ;;  %v872_v49 = vsel %vm672_vm14, %v1381_v31, 0.0  ;;  %v876_v31 = vsel %vm676_vm0, %v289_v43, 0.0 }
 0x1c1   :  { %v793_v48 = vadd.f32 %v791_v61, %v730_v63  ;;  %v931_v37 = vadd.f32 %v929_v38, %v868_v21  ;;  %v493_v3 = vmul.f32 %v1421_v59, %v1421_v59  ;;  %v495_v2 = vmul.f32 %v190_v9, %v190_v9 }
 0x1c2   :  { %v546_v58 = vadd.f32 %v545_v62, %v483_v7  ;;  %v738_v30 = vsel %vm674_vm15, %v502_v28, 0.0  ;;  %v497_v46 = vmul.f32 %v193_v24, %v193_v24 }
 0x1c3   :  { %v795_v1 = vadd.f32 %v793_v48, %v732_v6  ;;  %v933_v34 = vadd.f32 %v931_v37, %v870_v51 }
 0x1c4   :  { %v547_v23 = vadd.f32 %v546_v58, %v1404_v18  ;;  %v487_v18 = vmul.f32 %v1263_v12, %v1263_v12 }
 0x1c5   :  { %v797_v35 = vadd.f32 %v795_v1, %v734_v33  ;;  %v935_v41 = vadd.f32 %v933_v34, %v872_v49 }
 0x1c6   :  { %v548_v10 = vadd.f32 %v547_v23, %v485_v13  ;;  %v195_v54 = vpop.f32.mrf.mxu2 }
 0x1c7   :  { %v799_v27 = vadd.f32 %v797_v35, %v736_v20  ;;  %v937_v19 = vadd.f32 %v935_v41, %v874_v29 }
 0x1c8   :  { %v549_v14 = vadd.f32 %v548_v10, %v1416_v11 }
 0x1c9   :  { %v801_v42 = vadd.f32 %v799_v27, %v738_v30  ;;  %v939_v16 = vadd.f32 %v937_v19, %v876_v31 }
 0x1ca   :  { %v550_v57 = vadd.f32 %v549_v14, %v487_v18 }
 0x1cb   :  { %v803_v55 = vadd.f32 %v801_v42, %v740_v32 }
 0x1cc   :  { %v551_v12 = vadd.f32 %v550_v57, %v1431_v45 }
 0x1cd   :  { %804 = vadd.xlane.f32.xlu1 %v803_v55 }
 0x1ce   :  { %v552_v11 = vadd.f32 %v551_v12, %v489_v60  ;;  %v198_v8 = vpop.f32.mrf.mxu2 }
 0x1cf   :  { %v501_v63 = vmul.f32 %v198_v8, %v198_v8 }
 0x1d0   :  { %v553_v0 = vadd.f32 %v552_v11, %v1445_v22  ;;  %v499_v22 = vmul.f32 %v195_v54, %v195_v54 }
 0x1d2   :  { %v554_v36 = vadd.f32 %v553_v0, %v491_v26 }
 0x1d4   :  { %v555_v40 = vadd.f32 %v554_v36, %v1457_v47 }
 0x1d5   :  { %940 = vadd.xlane.f32.xlu1 %v939_v16 }
 0x1d6   :  { %v556_v45 = vadd.f32 %v555_v40, %v493_v3  ;;  %v200_v21 = vpop.f32.mrf.mxu2 }
 0x1d7   :  { %v503_v50 = vmul.f32 %v200_v21, %v200_v21 }
 0x1d8   :  { %v557_v52 = vadd.f32 %v556_v45, %v1470_v25 }
 0x1da   :  { %v558_v17 = vadd.f32 %v557_v52, %v495_v2 }
 0x1dc   :  { %v559_v56 = vadd.f32 %v558_v17, %v1481_v15 }
 0x1de   :  { %v560_v38 = vadd.f32 %v559_v56, %v497_v46 }
 0x1e0   :  { %v561_v61 = vadd.f32 %v560_v38, %v498_v4 }
 0x1e2   :  { %v562_v7 = vadd.f32 %v561_v61, %v499_v22 }
 0x1e4   :  { %v563_v62 = vadd.f32 %v562_v7, %v500_v53 }
 0x1e6   :  { %v564_v59 = vadd.f32 %v563_v62, %v501_v63 }
 0x1e8   :  { %v565_v47 = vadd.f32 %v564_v59, %v502_v28 }
 0x1ea   :  { %v566_v44 = vadd.f32 %v565_v47, %v503_v50 }
 0x1ec   :  { %v567_v43 = vadd.f32 %v566_v44, %v504_v5 }
 0x1ee   :  { %568 = vadd.xlane.f32.xlu0 %v567_v43 }
 0x240   :  { %v805_v9 = vpop.xlane.xlu1 %804 }
 0x241   :  { %v806_v48 = vrot.slane %v805_v9, 4 }
 0x243   :  { %v807_v58 = vadd.f32 %v806_v48, %v805_v9 }
 0x245   :  { %v808_v15 = vrot.slane %v807_v58, 2 }
 0x247   :  { %v809_v33 = vadd.f32 %v808_v15, %v807_v58 }
 0x248   :  { %v941_v25 = vpop.xlane.xlu1 %940 }
 0x249   :  { %v942_v6 = vrot.slane %v941_v25, 4  ;;  %v810_v51 = vrot.slane %v809_v33, 1 }
 0x24b   :  { %v943_v37 = vadd.f32 %v942_v6, %v941_v25  ;;  %v811_v10 = vadd.f32 %v810_v51, %v809_v33 }
 0x24d   :  { %v944_v1 = vrot.slane %v943_v37, 2 }
 0x24f   :  { %v945_v53 = vadd.f32 %v944_v1, %v943_v37 }
 0x251   :  { %v946_v20 = vrot.slane %v945_v53, 1 }
 0x253   :  { %v947_v30 = vadd.f32 %v946_v20, %v945_v53 }
 0x261   :  { %v569_v39 = vpop.xlane.xlu0 %568 }
 0x262   :  { %v570_v4 = vrot.slane %v569_v39, 4 }
 0x264   :  { %v571_v13 = vadd.f32 %v570_v4, %v569_v39 }
 0x266   :  { %v572_v23 = vrot.slane %v571_v13, 2 }
 0x268   :  { %v573_v35 = vadd.f32 %v572_v23, %v571_v13 }
 0x26a   :  { %v574_v28 = vrot.slane %v573_v35, 1 }
 0x26c   :  { %v575_v5 = vadd.f32 %v574_v28, %v573_v35 }
 0x26e   :  { %1017 = vpush %v575_v5 }
 0x26f   :  { %1019 = vpush %v811_v10 }
 0x270   :  { %1021 = vpush %v947_v30 }
 0x29f   :  { %s1018_s0 = spop %1017 }
 0x2a0   :  { %s1020_s1 = spop %1019 }
 0x2a1   :  { %s1022_s25 = spop %1021  ;;  %s952_s26 = ssub.f32 %s1018_s0, %s1020_s1 }
 0x2a2   :  { %s949_s27 = smul.f32 2.0, %s1022_s25 }
 0x2a3   :  { %s954_s29 = smul.f32 0.01, %s952_s26 }
 0x2a4   :  { %s950_s28 = ssub.f32 %s1020_s1, %s949_s27 }
 0x2a6   :  { %s951_s30 = sadd.f32 256.0, %s950_s28 }
 0x2a8   :  { %s955_s3 = sadd.f32 %s954_s29, %s951_s30 }
 0x2aa   :  { %v956_v34 = vstv %s955_s3 }
 0x2ab   :  { %958 = vst [vmem:[%s1542_s2] sm:$0xff] %v956_v34 }

</bundles_post_ra>
